<compile_context>
chip_gen: v7x
topology: tpu7x:2x2x1
jax: 0.10.0
libtpu: 0.0.40
codegen_flags: <defaults>
</compile_context>

<pallas_src>
import functools
import math

import numpy as np
import jax
import jax.numpy as jnp
from jax.experimental import pallas as pl
from jax.experimental.pallas import tpu as pltpu

LANES = 128
_MAX_TILE_BYTES = 2 << 20          # ~2 MiB x tile: measured HBM-roofline plateau
_MAX_RESIDENT_POS_BYTES = 8 << 20  # cap for the resident pos-period block (case B)
_FALLBACK_BLOCK_BYTES = 2 << 20    # cap per-block bytes on the (1,S,D) fallback
_DEFAULT_MIN_PALLAS_BYTES = 1 << 20  # below this, a fused XLA add wins


# --------------------------------------------------------------------------------------
# Sinusoid table (identical to the PyTorch buffer, host-side numpy).
# --------------------------------------------------------------------------------------
def _get_sinusoid_encoding_table(n_position: int, d_hid: int) -> jnp.ndarray:
    pos = np.arange(n_position)[:, None].astype(np.float64)            # (P, 1)
    hid = np.arange(d_hid)[None, :]                                     # (1, D)
    angle = pos / np.power(10000.0, 2.0 * (hid // 2) / d_hid)           # (P, D)
    table = np.empty_like(angle)
    table[:, 0::2] = np.sin(angle[:, 0::2])
    table[:, 1::2] = np.cos(angle[:, 1::2])
    return jnp.asarray(table, dtype=jnp.float32)


# --------------------------------------------------------------------------------------
# Kernels
# --------------------------------------------------------------------------------------
def _add_kernel(x_ref, p_ref, o_ref):
    # Packed path: x/out blocks (tr, 128); pos block either (tr, 128) (resident,
    # host-tiled period) or streamed with the same index as x.
    o_ref[...] = x_ref[...] + p_ref[...]


def _sliced_add_kernel(x_ref, p_ref, o_ref, *, tr, pos_blocks, sub):
    # Period larger than one tile: p_ref holds the WHOLE period (resident, constant
    # block index -> DMA'd once); slice the matching tr rows in-kernel.
    j = pl.program_id(0) % pos_blocks
    off = pl.multiple_of(j * tr, sub)
    o_ref[...] = x_ref[...] + p_ref[pl.ds(off, tr), :]


def _bcast_add_kernel(x_ref, p_ref, o_ref):
    # Fallback path: x block (1, S, D), pos block (S, D)  (block == full array dims).
    o_ref[...] = x_ref[...] + p_ref[...][None, :, :]


# --------------------------------------------------------------------------------------
# Helpers
# --------------------------------------------------------------------------------------
def _sublane_rows(dtype) -> int:
    itemsize = jnp.dtype(dtype).itemsize
    return max(8, 32 // max(1, itemsize))   # 8 for f32, 16 for bf16, 32 for int8


def _largest_divisor_leq(n: int, limit: int, multiple: int = 1):
    """Largest d with d | n, d <= limit, d % multiple == 0 (None if none)."""
    best = None
    d = multiple
    top = min(n, limit)
    while d <= top:
        if n % d == 0:
            best = d
        d += multiple
    return best


def _compiler_params():
    return pltpu.CompilerParams(
        dimension_semantics=("parallel",),      # elementwise add: shard grid across TCs
        vmem_limit_bytes=32 * 1024 * 1024,      # tiles chosen well under this (v7x-safe)
    )


# --------------------------------------------------------------------------------------
# Packed lane-dense path
# --------------------------------------------------------------------------------------
def _packed_add(x: jnp.ndarray, pos: jnp.ndarray):
    """x: (B,S,D); pos: (P,D) period with S % P == 0 (already cast to x.dtype).
    Returns x + broadcast/tiled pos, or None if the shape can't take this path."""
    B, S, D = x.shape
    P = pos.shape[0]
    dtype = x.dtype
    itemsize = jnp.dtype(dtype).itemsize
    sub = _sublane_rows(dtype)

    # Align the flattened period to 128-lane row boundaries (tile it by a small
    # factor g if needed; correctness requires the total repeat count % g == 0).
    if (P * D) % LANES != 0:
        g = LANES // math.gcd(P * D, LANES)
        if ((B * S) // P) % g != 0:
            return None
        pos = jnp.tile(pos, (g, 1))
        P *= g

    rows = (B * S * D) // LANES
    rp = (P * D) // LANES                  # packed rows per period
    x2 = x.reshape(rows, LANES)
    p2 = pos.reshape(rp, LANES)

    # Make the period row count a multiple of the sublane tile (dtype-aware).
    if rp % sub != 0:
        g = sub // math.gcd(rp, sub)
        if (rows // rp) % g != 0:
            return None
        p2 = jnp.tile(p2, (g, 1))
        rp *= g

    n_reps = rows // rp
    max_tile_rows = max(sub, _MAX_TILE_BYTES // (LANES * itemsize))
    # Keep >= 2 grid steps whenever possible so both v7x TensorCores get work.
    max_tr = min(max_tile_rows, max(sub, rows // 2))

    def _call(kernel, grid_n, tr, pos_spec, p_arr):
        out2 = pl.pallas_call(
            kernel,
            out_shape=jax.ShapeDtypeStruct((rows, LANES), dtype),
            grid=(grid_n,),
            in_specs=[pl.BlockSpec((tr, LANES), lambda i: (i, 0)), pos_spec],
            out_specs=pl.BlockSpec((tr, LANES), lambda i: (i, 0)),
            compiler_params=_compiler_params(),
        )(x2, p_arr)
        return out2.reshape(B, S, D)

    if n_reps == 1:
        # No repeat structure (e.g. B=1, S=P): stream pos alongside x.
        tr = _largest_divisor_leq(rows, max_tr, sub)
        return _call(_add_kernel, rows // tr, tr,
                     pl.BlockSpec((tr, LANES), lambda i: (i, 0)), p2)

    if rp <= max_tr:
        # Case A: host-tile the period up to ~max_tr rows; the pos block index is
        # constant, so the (small) pos tile stays resident in VMEM (DMA'd once).
        k = _largest_divisor_leq(n_reps, max(1, max_tr // rp))
        tr = rp * k
        if k > 1:
            p2 = jnp.tile(p2, (k, 1))
        return _call(_add_kernel, rows // tr, tr,
                     pl.BlockSpec((tr, LANES), lambda i: (0, 0)), p2)

    # Case B: period larger than the max tile.  Keep the whole period resident
    # (constant block index) and slice it in-kernel; x tile is the largest
    # sublane-aligned divisor of the period.
    if rp * LANES * itemsize > _MAX_RESIDENT_POS_BYTES:
        return None
    tr = _largest_divisor_leq(rp, max_tr, sub)
    pos_blocks = rp // tr
    kern = functools.partial(_sliced_add_kernel, tr=tr, pos_blocks=pos_blocks, sub=sub)
    return _call(kern, rows // tr, tr,
                 pl.BlockSpec((rp, LANES), lambda i: (0, 0)), p2)


# --------------------------------------------------------------------------------------
# Fallback: per-batch full-dims blocks (only for small, unalignable shapes)
# --------------------------------------------------------------------------------------
def _per_batch_add(x: jnp.ndarray, pos_full: jnp.ndarray) -> jnp.ndarray:
    B, S, D = x.shape
    return pl.pallas_call(
        _bcast_add_kernel,
        out_shape=jax.ShapeDtypeStruct((B, S, D), x.dtype),
        grid=(B,),
        in_specs=[
            pl.BlockSpec((1, S, D), lambda b: (b, 0, 0)),
            pl.BlockSpec((S, D), lambda b: (0, 0)),   # constant index -> resident
        ],
        out_specs=pl.BlockSpec((1, S, D), lambda b: (b, 0, 0)),
        compiler_params=_compiler_params(),
    )(x, pos_full)


# --------------------------------------------------------------------------------------
# Dispatch wrapper
# --------------------------------------------------------------------------------------
def _positional_add(x: jnp.ndarray, pos_period: jnp.ndarray, *,
                    min_pallas_bytes: int = _DEFAULT_MIN_PALLAS_BYTES) -> jnp.ndarray:
    """x: (B,S,D); pos_period: (P,D) with S % P == 0.
    Returns x + tile(pos_period, S//P) broadcast over batch."""
    B, S, D = x.shape
    P = pos_period.shape[0]
    assert pos_period.shape[1] == D and S % P == 0
    pos = pos_period.astype(x.dtype)              # avoid f32<->bf16 work in-kernel
    reps = S // P
    itemsize = jnp.dtype(x.dtype).itemsize
    nbytes = x.size * itemsize

    def _xla():
        p = pos if reps == 1 else jnp.tile(pos, (reps, 1))
        return x + p[None, :, :]

    if nbytes < min_pallas_bytes:
        # Tiny: launch/grid overhead dominates; let XLA fuse the add with neighbors.
        return _xla()

    out = _packed_add(x, pos)
    if out is not None:
        return out

    # Unalignable shape: per-batch full-dims blocks (bounded VMEM), else XLA.
    if S * D * itemsize <= _FALLBACK_BLOCK_BYTES:
        p_full = pos if reps == 1 else jnp.tile(pos, (reps, 1))
        return _per_batch_add(x, p_full)
    return _xla()


# --------------------------------------------------------------------------------------
# Module
# --------------------------------------------------------------------------------------
class PositionalEncodingPallas:
    """JAX/Pallas equivalent of lib/models/Models.py::PositionalEncoding."""

    def __init__(self, d_hid: int, n_position: int = 200,
                 min_pallas_bytes: int = _DEFAULT_MIN_PALLAS_BYTES):
        self.pos_table = _get_sinusoid_encoding_table(n_position, d_hid)
        self.pos_table2 = _get_sinusoid_encoding_table(n_position, d_hid)
        # jit fuses the reshape/tile plumbing and the pallas_call into one dispatch.
        self._add = jax.jit(
            functools.partial(_positional_add, min_pallas_bytes=int(min_pallas_bytes)))

    def forward(self, x: jnp.ndarray, n_person: int) -> jnp.ndarray:
        # n_person is unused in forward() (matches the PyTorch reference).
        S = x.shape[1]
        return self._add(x, self.pos_table[:S, :])

    def forward2(self, x: jnp.ndarray, n_person: int) -> jnp.ndarray:
        S = x.shape[1]
        n_person = int(n_person)
        assert S % n_person == 0, "forward2 requires x.shape[1] divisible by n_person"
        per = S // n_person
        # repeat(1, n_person, 1) of the per-person table is folded into the kernel's
        # resident pos block / index math instead of materializing an x-sized table.
        return self._add(x, self.pos_table2[:per, :])


# --------------------------------------------------------------------------------------
# Self-test
# --------------------------------------------------------------------------------------
if __name__ == "__main__":
    key = jax.random.PRNGKey(0)
    k1, k2, k3, k4 = jax.random.split(key, 4)

    def ref_forward(x, table):
        S = x.shape[1]
        return x + table[:S][None, :, :]

    def ref_forward2(x, table, n_person):
        per = x.shape[1] // n_person
        return x + jnp.tile(table[:per], (n_person, 1))[None, :, :]

    def check(out, ref):
        np.testing.assert_allclose(np.asarray(out), np.asarray(ref), rtol=1e-6, atol=1e-6)

    # 1) Small shape (B=2, S=8, D=32): exercises the per-batch full-dims Pallas path.
    #    (min_pallas_bytes=0 forces the Pallas path even for tiny tensors.)
    B, S, D = 2, 8, 32
    mod = PositionalEncodingPallas(d_hid=D, n_position=200, min_pallas_bytes=0)
    x = jax.random.normal(k1, (B, S, D), dtype=jnp.float32)
    check(jax.block_until_ready(mod.forward(x, n_person=2)), ref_forward(x, mod.pos_table))
    check(jax.block_until_ready(mod.forward2(x, n_person=2)), ref_forward2(x, mod.pos_table2, 2))

    # 2) Mid shape (B=2, S=64, D=256): packed lane-dense path, resident pos block.
    B, S, D = 2, 64, 256
    mod = PositionalEncodingPallas(d_hid=D, n_position=200, min_pallas_bytes=0)
    x = jax.random.normal(k2, (B, S, D), dtype=jnp.float32)
    check(jax.block_until_ready(mod.forward(x, n_person=2)), ref_forward(x, mod.pos_table))
    check(jax.block_until_ready(mod.forward2(x, n_person=2)), ref_forward2(x, mod.pos_table2, 2))

    # 3) Single-repeat shape (B=1, S=P): streamed-pos packed path.
    B, S, D = 1, 256, 512
    mod = PositionalEncodingPallas(d_hid=D, n_position=256, min_pallas_bytes=0)
    x = jax.random.normal(k3, (B, S, D), dtype=jnp.float32)
    check(jax.block_until_ready(mod.forward(x, n_person=1)), ref_forward(x, mod.pos_table))

    # 4) Large period (rp > max tile): resident-period + in-kernel pl.ds slice path.
    B, S, D = 2, 200, 4096
    mod = PositionalEncodingPallas(d_hid=D, n_position=200, min_pallas_bytes=0)
    x = jax.random.normal(k4, (B, S, D), dtype=jnp.float32)
    check(jax.block_until_ready(mod.forward(x, n_person=2)), ref_forward(x, mod.pos_table))

    print("KERNEL_OK")
</pallas_src>

<mosaic_0001>
module attributes {stable_mosaic.version = 11 : i64} {
  func.func @_bcast_add_kernel(%arg0: i32, %arg1: memref<1x8x32xf32, #tpu.memory_space<vmem>>, %arg2: memref<8x32xf32, #tpu.memory_space<vmem>>, %arg3: memref<1x8x32xf32, #tpu.memory_space<vmem>>) attributes {dimension_semantics = [#tpu.dimension_semantics<parallel>], iteration_bounds = array<i64: 2>, scalar_prefetch = 0 : i64, scratch_operands = 0 : i64, tpu.core_type = #tpu.core_type<tc>, window_params = [{transform_indices = @transform_0, window_bounds = array<i64: 1, 8, 32>}, {pipeline_mode = #tpu.pipeline_mode<synchronous>, transform_indices = @transform_1, window_bounds = array<i64: 8, 32>}, {transform_indices = @transform_2, window_bounds = array<i64: 1, 8, 32>}]} {
    %c0 = arith.constant 0 : index
    %c0_0 = arith.constant 0 : index
    %c0_1 = arith.constant 0 : index
    %0 = vector.load %arg1[%c0, %c0_0, %c0_1] : memref<1x8x32xf32, #tpu.memory_space<vmem>>, vector<1x8x32xf32>
    %c0_2 = arith.constant 0 : index
    %c0_3 = arith.constant 0 : index
    %1 = vector.load %arg2[%c0_2, %c0_3] : memref<8x32xf32, #tpu.memory_space<vmem>>, vector<8x32xf32>
    %2 = vector.shape_cast %1 : vector<8x32xf32> to vector<1x8x32xf32>
    %3 = arith.addf %0, %2 : vector<1x8x32xf32>
    %c0_4 = arith.constant 0 : index
    %c0_5 = arith.constant 0 : index
    %c0_6 = arith.constant 0 : index
    %4 = vector.load %arg3[%c0_4, %c0_5, %c0_6] : memref<1x8x32xf32, #tpu.memory_space<vmem>>, vector<1x8x32xf32>
    tpu.vector_store %arg3[%c0_4, %c0_5, %c0_6], %3 {strides = array<i32>} : memref<1x8x32xf32, #tpu.memory_space<vmem>>, vector<1x8x32xf32>,
    return
  }
  func.func @transform_0(%arg0: i32) -> (i32, i32, i32) {
    %c0_i32 = arith.constant 0 : i32
    %c0_i32_0 = arith.constant 0 : i32
    %c0_i32_1 = arith.constant 0 : i32
    return %arg0, %c0_i32, %c0_i32_0 : i32, i32, i32
  }
  func.func @transform_1(%arg0: i32) -> (i32, i32) {
    %c0_i32 = arith.constant 0 : i32
    %c0_i32_0 = arith.constant 0 : i32
    %c0_i32_1 = arith.constant 0 : i32
    return %c0_i32, %c0_i32_0 : i32, i32
  }
  func.func @transform_2(%arg0: i32) -> (i32, i32, i32) {
    %c0_i32 = arith.constant 0 : i32
    %c0_i32_0 = arith.constant 0 : i32
    %c0_i32_1 = arith.constant 0 : i32
    return %arg0, %c0_i32, %c0_i32_0 : i32, i32, i32
  }
}

</mosaic_0001>

<bundles_post_ra>
// kernel: _positional_add.1
= control target key start
LH: loop header
LB: loop body
LE: loop exit
PB: predicated region body
PF: predicated region fallthrough
CT: control target
= control target key end

     0   :  { %7 = vsyncpa [#allocation3], 0  ;;  %s691_s0 = inlined_call_operand.hbm [shape: f32[2,8,32], index: 0, kind: input, shape index: {}]   ;;  %s692_s1 = inlined_call_operand.hbm [shape: f32[8,32], index: 1, kind: input, shape index: {}]   ;;  %s693_s2 = inlined_call_operand.hbm [shape: f32[2,8,32], index: 2, kind: output, shape index: {}]  }
   0x1   :  { %9 = vsyncpa [#allocation3 + $0x1], 0 }
   0x2   :  { %10 = vsyncpa [#allocation6], 0 }
   0x3   :  { %11 = vsyncpa [#allocation4], 0 }
   0x4   :  { %13 = vsyncpa [#allocation4 + $0x1], 0  ;;  %s490_s9 = smov 0   ;;  %s492_s10 = smov 0  }
   0x5   :  { %s494_s11 = smov 0   ;;  %s496_s12 = smov 0  }
   0x6 LB: > { %s511_s13 = sadd.s32 4294967295, %s470_s12   ;;  %s271_s14 = sadd.s32 4294967294, %s470_s12   ;;  %s470_s12 = sphi %s496_s12, %s717_s12   ;;  %s466_s11 = sphi %s494_s11, %s716_s11   ;;  %s462_s10 = sphi %s492_s10, %s715_s10   ;;  %s458_s9 = sphi %s490_s9, %s714_s9  }
   0x7   : > { %p39_p0 = scmp.ne.s32.totalorder %s462_s10, %s458_s9  ;;  %p694_p1 = scmp.eq.s32.totalorder %s511_s13, 0 }
   0x8   : > { %p90_p3 = scmp.eq.s32.totalorder %s271_s14, 1  ;;  %p272_p5 = scmp.ge.s32.totalorder %s470_s12, 1 }
   0x9   : > { %p520_p4 = por %p694_p1, %p39_p0  ;;  %p97_p7 = scmp.lt.s32.totalorder %s470_s12, 3 }
   0xa   : > { %p525_p6 = por %p90_p3, %p39_p0  ;;  %s472_s18 = smov [#allocation5]  }
   0xb   : > { %s697_s15 = scalar_select %p520_p4, 1, 0 }
   0xc   : > { %s698_s16 = scalar_select %p525_p6, 1, 0 }
   0xd   : > { %p530_p8 = pnand %p272_p5, %p97_p7  ;;  %s110_s19 = sshll.u32 %s472_s18, 4  ;;  %s111_s19 = int_to_ptr.vmem [resolvable:$true] %s110_s19 }
   0xe   : > { %s538_s20 = sadd.s32 1, %s470_s12   ;;  %s26_s24 = sadd.s32 1, %s466_s11 }
   0xf   : > { %s699_s17 = scalar_select %p530_p8, 1, 0 }
  0x10   : > { %p293_p10 = pneg %p530_p8  ;;  %s23_s22 = ssub.s32 %s470_s12, %s538_s20 }
  0x11   : > { %p548_p12 = scmp.eq.s32.totalorder %s23_s22, 0  ;;  %s342_s27 = scalar_lea.hbm %s692_s1, 128 }
  0x12   : > { %p542_p11 = pnand %p293_p10, %p694_p1  ;;  %p343_p0 = scmp.ne.s32.totalorder %s692_s1, %s342_s27 }
  0x13   : > { %s701_s23 = scalar_select %p548_p12, 1, 0 }
  0x14   : > { %p344_p3 = pneg %p542_p11  ;;  %p349_p10 = scmp.lt.u32.totalorder %s342_s27, %s692_s1 }
  0x16   : > { %p345_p5 = pnand %p344_p3, %p343_p0 }
  0x18   : > { %p346_p7 = pneg %p345_p5 }
  0x1a   : > { %p351_p9 = pnand %p349_p10, %p346_p7 }
  0x1c   : > { %354 = shalt.err (!%p351_p9)
}
  0x1d   : > { %s355_s4 = scalar_lea.vmem %s111_s19, 128  ;;  %p363_p6 = scmp.lt.s32.totalorder %s111_s19, %s111_s19 }
  0x1e   : > { %p356_p1 = scmp.ne.s32.totalorder %s111_s19, %s355_s4  ;;  %p364_p4 = scmp.lt.s32.totalorder %s355_s4, %s355_s4 }
  0x20   : > { %p358_p2 = pnand %p356_p1, %p344_p3  ;;  %p365_p8 = por %p364_p4, %p363_p6 }
  0x22   : > { %p359_p13 = pneg %p358_p2 }
  0x24   : > { %p366_p12 = pnand %p365_p8, %p359_p13 }
  0x26   : > { %369 = shalt.err (!%p366_p12)
}
  0x27   : > { %296 = dma.hbm_to_vmem [thread:$0]  (!%p542_p11), %s692_s1, 128, %s111_s19, [#allocation6]  }
  0x28   : > { %p702_p1 = scmp.ne.s32.totalorder %s701_s23, 0  ;;  %p34_p2 = scmp.eq.s32.totalorder %s470_s12, 0 }
  0x29   : > { %p703_p4 = scmp.ne.s32.totalorder %s466_s11, %s462_s10  ;;  %p704_p6 = scmp.eq.s32.totalorder %s511_s13, 1 }
  0x2a   : > { %s574_s7 = scalar_select %p702_p1, %s466_s11, %s26_s24  }
  0x2b   : > { %p582_p8 = por %p704_p6, %p703_p4  ;;  %p306_p9 = scmp.lt.s32.totalorder %s470_s12, 2 }
  0x2c   : > { %s121_s14 = sand.u32 1, %s466_s11   ;;  %p706_p12 = pmov %p703_p4 }
  0x2d   : > { %s275_s18 = sshll.u32 %s121_s14, 3  ;;  %s276_s21 = sshll.u32 %s470_s12, 7 }
  0x2e   : > { %p35_p13 = por %p34_p2, %p706_p12  ;;  %s595_s19 = scalar_lea.hbm %s691_s0, %s276_s21 }
  0x2f   : > { %s125_s23 = scalar_lea.vmem [#allocation2], %s275_s18  ;;  %s122_s27 = scalar_lea.sflag [#allocation3], %s121_s14 }
  0x30   : > { %s132_s24 = sshll.u32 %s125_s23, 4  ;;  %p597_p11 = pnand %p306_p9, %p35_p13  ;;  %s601_s24 = int_to_ptr.vmem [resolvable:$true] %s132_s24 }
  0x31   : > { %s370_s28 = scalar_lea.hbm %s595_s19, 128  ;;  %s375_s3 = scalar_lea.hbm %s691_s0, 256 }
  0x32   : > { %p371_p0 = scmp.ne.s32.totalorder %s595_s19, %s370_s28  ;;  %p372_p3 = pneg %p597_p11 }
  0x33   : > { %p376_p10 = scmp.lt.u32.totalorder %s595_s19, %s691_s0  ;;  %p377_p1 = scmp.lt.u32.totalorder %s375_s3, %s370_s28 }
  0x34   : > { %p373_p5 = pnand %p372_p3, %p371_p0  ;;  %p379_p4 = scmp.lt.u32.totalorder %s370_s28, %s595_s19 }
  0x35   : > { %p378_p2 = por %p377_p1, %p376_p10 }
  0x36   : > { %p374_p7 = pneg %p373_p5 }
  0x37   : > { %p380_p6 = por %p379_p4, %p378_p2 }
  0x39   : > { %p381_p9 = pnand %p380_p6, %p374_p7 }
  0x3b   : > { %384 = shalt.err (!%p381_p9)
}
  0x3c   : > { %s385_s6 = scalar_lea.vmem %s601_s24, 128  ;;  %s473_s14 = smov [#allocation2]  }
  0x3d   : > { %p386_p12 = scmp.ne.s32.totalorder %s601_s24, %s385_s6  ;;  %s390_s18 = sshll.u32 %s473_s14, 4  ;;  %s391_s18 = int_to_ptr.vmem [resolvable:$false] %s390_s18 }
  0x3e   : > { %s392_s21 = scalar_lea.vmem %s391_s18, 256  ;;  %p393_p5 = scmp.lt.s32.totalorder %s601_s24, %s391_s18 }
  0x3f   : > { %p388_p13 = pnand %p386_p12, %p372_p3  ;;  %p394_p10 = scmp.lt.s32.totalorder %s392_s21, %s385_s6 }
  0x41   : > { %p389_p0 = pneg %p388_p13  ;;  %p395_p1 = por %p394_p10, %p393_p5 }
  0x43   : > { %p396_p2 = pnand %p395_p1, %p389_p0 }
  0x45   : > { %399 = shalt.err (!%p396_p2)
}
  0x46   : > { %300 = dma.hbm_to_vmem [thread:$0]  (!%p597_p11), %s595_s19, 128, %s601_s24, %s122_s27  }
  0x47   : > { %p708_p7 = scmp.ne.s32.totalorder %s699_s17, 0 }
  0x48   : > { %s631_s22 = sand.u32 (!%p708_p7), 1, %s462_s10   ;;  %p709_p3 = scmp.ne.s32.totalorder (!%p708_p7), %s697_s15, 0 }
  0x49   : > { %141 = sbr.rel (%p708_p7) target bundleno = 109 (0x6d), region = 28  ;;  %s278_s25 = sshll.u32 (!%p708_p7), %s631_s22, 3 }
  0x4a   : > { %s144_s23 = scalar_lea.sflag (!%p708_p7), [#allocation3], %s631_s22  ;;  %s147_s28 = scalar_lea.vmem (!%p708_p7), [#allocation2], %s278_s25 }
  0x50   : > { %445 = dma.done.wait (%p709_p3), %s144_s23, 128  }
  0x51   : > { %447 = vsyncadd (%p709_p3), %s144_s23, 4294967168  ;;  %p710_p4 = scmp.eq.s32.totalorder %s511_s13, 0 }
  0x53   : > { %449 = dma.done.wait (%p710_p4), [#allocation6], 128   ;;  %p711_p11 = pmov %p710_p4 }
  0x54   : > { %s171_s17 = scalar_lea.vmem [#allocation7], %s278_s25  ;;  %s282_s24 = sshll.u32 %s511_s13, 7  ;;  %v172_v0 = vld [vmem:[%s147_s28] sm:$0xff]  ;;  %v173_v1 = vld [vmem:[#allocation5] sm:$0xff]  ;;  %vm175_vm0 = vcmask 261120  }
  0x55   : > { %451 = vsyncadd (%p711_p11), [#allocation6], 4294967168  ;;  %s191_s19 = sshll.u32 %s171_s17, 4  ;;  %v174_v2 = vadd.f32 %v173_v1, %v172_v0  ;;  %s649_s27 = scalar_lea.hbm %s693_s2, %s282_s24  ;;  %s644_s19 = int_to_ptr.vmem [resolvable:$true] %s191_s19 }
  0x56   : > { %s178_s29 = scalar_lea.sflag [#allocation4], %s631_s22  ;;  %s400_s30 = scalar_lea.vmem %s644_s19, 128 }
  0x57   : > { %176 = vst.msk [vmem:[%s171_s17] sm:$0xff] %vm175_vm0, %v174_v2  ;;  %p401_p6 = scmp.ne.s32.totalorder %s644_s19, %s400_s30  ;;  %s474_s13 = smov [#allocation7]  }
  0x58   : > { %s404_s3 = sshll.u32 %s474_s13, 4  ;;  %s405_s3 = int_to_ptr.vmem [resolvable:$false] %s404_s3 }
  0x59   : > { %p402_p9 = pnand %p401_p6, %p582_p8  ;;  %s406_s4 = scalar_lea.vmem %s405_s3, 256 }
  0x5a   : > { %p407_p13 = scmp.lt.s32.totalorder %s644_s19, %s405_s3  ;;  %p408_p0 = scmp.lt.s32.totalorder %s406_s4, %s400_s30 }
  0x5b   : > { %p403_p12 = pneg %p402_p9 }
  0x5c   : > { %p409_p5 = por %p408_p0, %p407_p13 }
  0x5e   : > { %p410_p10 = pnand %p409_p5, %p403_p12 }
  0x60   : > { %413 = shalt.err (!%p410_p10)
}
  0x61   : > { %s414_s5 = scalar_lea.hbm %s649_s27, 128  ;;  %s418_s18 = scalar_lea.hbm %s693_s2, 256 }
  0x62   : > { %p415_p1 = scmp.ne.s32.totalorder %s649_s27, %s414_s5  ;;  %p419_p3 = scmp.lt.u32.totalorder %s649_s27, %s693_s2 }
  0x63   : > { %p420_p4 = scmp.lt.u32.totalorder %s418_s18, %s414_s5  ;;  %p422_p6 = scmp.lt.u32.totalorder %s414_s5, %s649_s27 }
  0x64   : > { %p416_p2 = pnand %p415_p1, %p582_p8 }
  0x65   : > { %p421_p11 = por %p420_p4, %p419_p3 }
  0x66   : > { %p417_p7 = pneg %p416_p2 }
  0x67   : > { %p423_p9 = por %p422_p6, %p421_p11 }
  0x69   : > { %p424_p12 = pnand %p423_p9, %p417_p7 }
  0x6b   : > { %427 = shalt.err (!%p424_p12)
}
  0x6c   : > { %291 = dma.vmem_to_hbm [thread:$0]  (%p582_p8), %s644_s19, 128, %s649_s27, %s178_s29  }
  0x6d PF: > { %s203_s25 = sand.u32 1, %s458_s9   ;;  %p712_p13 = scmp.ne.s32.totalorder %s698_s16, 0 }
  0x6e   : > { %p713_p0 = scmp.ge.s32.totalorder %s470_s12, 2  ;;  %s204_s23 = scalar_lea.sflag [#allocation4], %s203_s25 }
  0x70   : > { %p302_p5 = pnand %p713_p0, %p712_p13 }
  0x72   : > { %453 = dma.done.wait (!%p302_p5), %s204_s23, 128  }
  0x73   : > { %455 = vsyncadd (!%p302_p5), %s204_s23, 4294967168  ;;  %p16_p10 = scmp.ge.s32.totalorder %s538_s20, 4   ;;  %s714_s9 = smov %s462_s10 }
  0x74   : > { %s715_s10 = smov %s466_s11  ;;  %s716_s11 = smov %s574_s7 }
  0x75   : > { %s717_s12 = smov %s538_s20  ;;  %18 = sbr.rel (!%p16_p10) target bundleno = 6 (0x6), region = 77 }
  0x7c   :  { %209 = vsyncpa [#allocation3], 1 }
  0x7d   :  { %211 = vsyncpa [#allocation3 + $0x1], 1 }
  0x7e   :  { %212 = vsyncpa [#allocation6], 1 }
  0x7f   :  { %213 = vsyncpa [#allocation4], 1 }
  0x80   :  { %215 = vsyncpa [#allocation4 + $0x1], 1 }

</bundles_post_ra>
